<compile_context>
chip_gen: v6e
topology: v6e:2x2x1
jax: 0.10.0
libtpu: 0.0.40
codegen_flags: <defaults>
</compile_context>

<pallas_src>
import math

import jax
import jax.numpy as jnp
from jax.experimental import pallas as pl
from jax.experimental.pallas import tpu as pltpu

_LANE = 128
_VMEM_TILE_BUDGET = 20 * 1024 * 1024   # target double-buffered tile footprint
_VMEM_LIMIT_BYTES = 32 * 1024 * 1024   # < 64 MiB physical VMEM on v7x, fine on v5e/v6e


def _round_up(x, m):
    return ((x + m - 1) // m) * m


# --------------------------- Pallas kernels ---------------------------------

def _mm_shift_silu_kernel(x_ref, w_ref, sh_ref, o_ref):
    # bf16 operands -> MXU, f32 accumulation; BN shift + SiLU epilogue in f32.
    acc = jnp.dot(x_ref[...], w_ref[...], preferred_element_type=jnp.float32)
    acc = acc + sh_ref[...]
    acc = acc * jax.nn.sigmoid(acc)          # SiLU
    o_ref[...] = acc.astype(o_ref.dtype)


def _dw_shift_silu_kernel(x_ref, w_ref, sh_ref, o_ref):
    # Depthwise conv as an unrolled accumulate loop over the k*k taps.
    # (No (P, TM, TC) temporary + sum(axis=0): that would spill vregs.)
    acc = jnp.zeros(o_ref.shape, jnp.float32)
    for p in range(x_ref.shape[0]):          # static unroll; P = k*k
        acc = acc + x_ref[p].astype(jnp.float32) * w_ref[p]
    acc = acc + sh_ref[...]
    acc = acc * jax.nn.sigmoid(acc)          # SiLU
    o_ref[...] = acc.astype(o_ref.dtype)


def _pick_mm_tiles(M, Kp, Np):
    """Largest (TM, TN) fitting the VMEM budget; prefer TN = full Np so the
    weight is DMA'd once and output stores are lane-dense."""
    tn_candidates = [Np] + [t for t in (1024, 512, 256, 128) if t < Np]
    for tn in tn_candidates:
        for tm in (1024, 512, 256, 128):
            need = (2 * tm * Kp * 2      # x blocks (bf16, double buffered)
                    + 2 * Kp * tn * 2    # w blocks (bf16)
                    + 2 * tm * tn * 4    # out blocks (f32)
                    + 2 * tn * 4)        # shift
            if need <= _VMEM_TILE_BUDGET:
                return min(tm, _round_up(M, 8)), tn
    # TODO(synk): add a K grid axis ('arbitrary', last) with an f32 VMEM
    # accumulator for extremely large k*k*Cin.
    return min(128, _round_up(M, 8)), 128


def matmul_shift_silu(x, w_folded, shift):
    """silu((x @ w_folded) + shift).  x:(M,K), w_folded:(K,N) (BN scale already
    folded into columns), shift:(N,).  Returns (M,N) f32."""
    M, K = x.shape
    N = w_folded.shape[1]
    Kp, Np = _round_up(K, _LANE), _round_up(N, _LANE)

    xb = jnp.pad(x.astype(jnp.bfloat16), ((0, 0), (0, Kp - K)))       # pad K only
    wb = jnp.pad(w_folded.astype(jnp.bfloat16), ((0, Kp - K), (0, Np - N)))
    shp = jnp.pad(shift.astype(jnp.float32).reshape(1, N), ((0, 0), (0, Np - N)))

    TM, TN = _pick_mm_tiles(M, Kp, Np)
    grid = (pl.cdiv(M, TM), pl.cdiv(Np, TN))   # partial last M block handled by Pallas
    out = pl.pallas_call(
        _mm_shift_silu_kernel,
        out_shape=jax.ShapeDtypeStruct((M, Np), jnp.float32),
        grid_spec=pltpu.PrefetchScalarGridSpec(
            num_scalar_prefetch=0,
            grid=grid,
            in_specs=[
                pl.BlockSpec((TM, Kp), lambda i, j: (i, 0)),
                pl.BlockSpec((Kp, TN), lambda i, j: (0, j)),   # constant when TN == Np
                pl.BlockSpec((1, TN), lambda i, j: (0, j)),
            ],
            out_specs=pl.BlockSpec((TM, TN), lambda i, j: (i, j)),
        ),
        compiler_params=pltpu.CompilerParams(
            dimension_semantics=("parallel", "parallel"),
            vmem_limit_bytes=_VMEM_LIMIT_BYTES),
    )(xb, wb, shp)
    return out[:, :N]


def depthwise_shift_silu(patches, w_folded, shift):
    """patches:(P,M,C), w_folded:(P,C) (BN scale folded), shift:(C,)
    -> silu(sum_p patches[p]*w_folded[p] + shift) : (M,C) f32."""
    P, M, C = patches.shape
    Cp = _round_up(C, _LANE)
    xb = jnp.pad(patches.astype(jnp.bfloat16), ((0, 0), (0, 0), (0, Cp - C)))
    wp = jnp.pad(w_folded.astype(jnp.float32).reshape(P, 1, C),
                 ((0, 0), (0, 0), (0, Cp - C)))
    shp = jnp.pad(shift.astype(jnp.float32).reshape(1, C), ((0, 0), (0, Cp - C)))

    TM = 128
    for tm in (1024, 512, 256, 128):
        if 2 * P * tm * Cp * 2 + 2 * tm * Cp * 4 + 2 * P * Cp * 4 <= _VMEM_TILE_BUDGET:
            TM = tm
            break
    TM = min(TM, _round_up(M, 8))
    out = pl.pallas_call(
        _dw_shift_silu_kernel,
        out_shape=jax.ShapeDtypeStruct((M, Cp), jnp.float32),
        grid_spec=pltpu.PrefetchScalarGridSpec(
            num_scalar_prefetch=0,
            grid=(pl.cdiv(M, TM),),
            in_specs=[
                pl.BlockSpec((P, TM, Cp), lambda i: (0, i, 0)),
                pl.BlockSpec((P, 1, Cp), lambda i: (0, 0, 0)),
                pl.BlockSpec((1, Cp), lambda i: (0, 0)),
            ],
            out_specs=pl.BlockSpec((TM, Cp), lambda i: (i, 0)),
        ),
        compiler_params=pltpu.CompilerParams(
            dimension_semantics=("parallel",),
            vmem_limit_bytes=_VMEM_LIMIT_BYTES),
    )(xb, wp, shp)
    return out[:, :C]


# --------------------------- JAX glue ----------------------------------------

def _im2col(x, k, stride, pad):
    """x:(B,H,W,C) NHWC -> (B*Ho*Wo, k*k*C) patches ordered (kh,kw,c)."""
    B, H, W, C = x.shape
    if pad:
        x = jnp.pad(x, ((0, 0), (pad, pad), (pad, pad), (0, 0)))
    Hp, Wp = H + 2 * pad, W + 2 * pad
    Ho = (Hp - k) // stride + 1
    Wo = (Wp - k) // stride + 1
    cols = []
    for i in range(k):
        for j in range(k):
            cols.append(x[:, i:i + stride * Ho:stride, j:j + stride * Wo:stride, :])
    patches = jnp.stack(cols, axis=3)        # (B, Ho, Wo, k*k, C)
    # TODO(synk): replace host-side im2col (k^2 HBM amplification) with an
    # in-kernel (kh,kw) reduction over halo blocks.
    return patches.reshape(B * Ho * Wo, k * k * C), Ho, Wo


def _dw_patches(x, k, stride, pad):
    """x:(B,H,W,C) -> (k*k, B*Ho*Wo, C) shifted strided slices for depthwise conv."""
    B, H, W, C = x.shape
    xp = jnp.pad(x, ((0, 0), (pad, pad), (pad, pad), (0, 0)))
    Hp, Wp = H + 2 * pad, W + 2 * pad
    Ho = (Hp - k) // stride + 1
    Wo = (Wp - k) // stride + 1
    cols = []
    for i in range(k):
        for j in range(k):
            cols.append(xp[:, i:i + stride * Ho:stride, j:j + stride * Wo:stride, :]
                        .reshape(B * Ho * Wo, C))
    # TODO(synk): replace the k^2 shifted copies with in-kernel halo-block indexing.
    return jnp.stack(cols, axis=0), Ho, Wo


def bn_fold(gamma, beta, mean, var, eps=1e-5):
    scale = gamma / jnp.sqrt(var + eps)
    return scale, beta - mean * scale


# --------------------------- CNNBlock params / prepare / apply ---------------

def init_cnn_block(key, in_channels, out_channels, kernel_size, stride, padding, groups=1):
    k1, k2, k3, k4, k5 = jax.random.split(key, 5)
    cin_g = in_channels // groups
    fan_in = cin_g * kernel_size * kernel_size
    w = jax.random.normal(k1, (out_channels, cin_g, kernel_size, kernel_size),
                          jnp.float32) / math.sqrt(fan_in)
    return dict(
        w=w,
        gamma=1.0 + 0.1 * jax.random.normal(k2, (out_channels,), jnp.float32),
        beta=0.1 * jax.random.normal(k3, (out_channels,), jnp.float32),
        mean=0.1 * jax.random.normal(k4, (out_channels,), jnp.float32),
        var=0.5 + jax.random.uniform(k5, (out_channels,), jnp.float32),
        in_channels=in_channels, out_channels=out_channels,
        k=kernel_size, stride=stride, pad=padding, groups=groups)


def prepare_cnn_block(p):
    """One-time: fold eval-mode BN scale into conv weights, pre-transpose/
    reshape to matmul layout, pre-cast MXU operands to bf16."""
    scale, shift = bn_fold(p["gamma"], p["beta"], p["mean"], p["var"])
    k, groups = p["k"], p["groups"]
    prep = dict(p)
    prep["shift"] = shift
    if groups == p["in_channels"] and p["out_channels"] == p["in_channels"]:
        # depthwise: (C,1,k,k) -> (k*k, C), BN scale folded in (kept f32; VPU path)
        wdw = jnp.transpose(p["w"][:, 0], (1, 2, 0)).reshape(k * k, p["out_channels"])
        prep["w_dw"] = wdw * scale[None, :]
        prep["mode"] = "depthwise"
    else:
        # (Cout, Cin/g, k, k) -> per-group (k*k*Cin_g, Cout_g), scale folded, bf16
        cout_g = p["out_channels"] // groups
        wmats = []
        for g in range(groups):
            wg = p["w"][g * cout_g:(g + 1) * cout_g]          # (cout_g, cin_g, k, k)
            wm = jnp.transpose(wg, (2, 3, 1, 0)).reshape(k * k * wg.shape[1], cout_g)
            wmats.append((wm * scale[g * cout_g:(g + 1) * cout_g][None, :])
                         .astype(jnp.bfloat16))
        prep["w_mats"] = wmats
        prep["mode"] = "dense" if groups == 1 else "grouped"
    return prep


def cnn_block_apply(prep, x_nchw):
    """CNNBlock forward (Conv2d -> BN(eval) -> SiLU). NCHW in, NCHW out."""
    x = jnp.transpose(x_nchw, (0, 2, 3, 1)).astype(jnp.float32)   # NHWC compute layout
    B = x.shape[0]
    k, stride, pad, groups = prep["k"], prep["stride"], prep["pad"], prep["groups"]
    cout = prep["out_channels"]
    if prep["mode"] == "depthwise":
        patches, Ho, Wo = _dw_patches(x, k, stride, pad)
        y = depthwise_shift_silu(patches, prep["w_dw"], prep["shift"])
        y = y.reshape(B, Ho, Wo, cout)
    else:
        cin_g = prep["in_channels"] // groups
        cout_g = cout // groups
        outs = []
        for g in range(groups):
            xs = x[..., g * cin_g:(g + 1) * cin_g]
            patches, Ho, Wo = _im2col(xs, k, stride, pad)
            o = matmul_shift_silu(patches, prep["w_mats"][g],
                                  prep["shift"][g * cout_g:(g + 1) * cout_g])
            outs.append(o.reshape(B, Ho, Wo, cout_g))
        y = outs[0] if groups == 1 else jnp.concatenate(outs, axis=-1)
    return jnp.transpose(y, (0, 3, 1, 2))   # back to NCHW (PyTorch layout)


# --------------------------- pure-JAX reference -------------------------------

def cnn_block_reference(p, x_nchw):
    dn = jax.lax.conv_dimension_numbers(x_nchw.shape, p["w"].shape,
                                        ("NCHW", "OIHW", "NCHW"))
    y = jax.lax.conv_general_dilated(
        x_nchw, p["w"], window_strides=(p["stride"], p["stride"]),
        padding=[(p["pad"], p["pad"]), (p["pad"], p["pad"])],
        dimension_numbers=dn, feature_group_count=p["groups"])
    scale, shift = bn_fold(p["gamma"], p["beta"], p["mean"], p["var"])
    y = y * scale[None, :, None, None] + shift[None, :, None, None]
    return y * jax.nn.sigmoid(y)


# ------------------------------- demo -----------------------------------------

if __name__ == "__main__":
    root = jax.random.PRNGKey(0)
    kx, kb1, kb2 = jax.random.split(root, 3)
    x = jax.random.normal(kx, (2, 4, 16, 16), jnp.float32)   # NCHW, like the PyTorch module

    # 1) dense CNNBlock(4, 32, kernel_size=3, stride=1, padding=1)
    p1 = init_cnn_block(kb1, 4, 32, kernel_size=3, stride=1, padding=1, groups=1)
    y1 = jax.block_until_ready(cnn_block_apply(prepare_cnn_block(p1), x))
    assert y1.shape == (2, 32, 16, 16) and y1.dtype == jnp.float32
    ref1 = cnn_block_reference(p1, x)
    assert bool(jnp.allclose(y1, ref1, atol=1e-1, rtol=1e-1)), "dense CNNBlock mismatch"

    # 2) depthwise CNNBlock(32, 32, kernel_size=5, stride=2, padding=2, groups=32)
    p2 = init_cnn_block(kb2, 32, 32, kernel_size=5, stride=2, padding=2, groups=32)
    y2 = jax.block_until_ready(cnn_block_apply(prepare_cnn_block(p2), ref1))
    assert y2.shape == (2, 32, 8, 8) and y2.dtype == jnp.float32
    ref2 = cnn_block_reference(p2, ref1)
    assert bool(jnp.allclose(y2, ref2, atol=1e-1, rtol=1e-1)), "depthwise CNNBlock mismatch"

    print("KERNEL_OK")
</pallas_src>

<mosaic_0001>
module attributes {stable_mosaic.version = 11 : i64} {
  func.func @_mm_shift_silu_kernel(%arg0: i32, %arg1: i32, %arg2: memref<512x128xbf16, #tpu.memory_space<vmem>>, %arg3: memref<128x128xbf16, #tpu.memory_space<vmem>>, %arg4: memref<1x128xf32, #tpu.memory_space<vmem>>, %arg5: memref<512x128xf32, #tpu.memory_space<vmem>>) attributes {dimension_semantics = [#tpu.dimension_semantics<parallel>, #tpu.dimension_semantics<parallel>], iteration_bounds = array<i64: 1, 1>, scalar_prefetch = 0 : i64, scratch_operands = 0 : i64, tpu.core_type = #tpu.core_type<tc>, window_params = [{transform_indices = @transform_0, window_bounds = array<i64: 512, 128>}, {transform_indices = @transform_1, window_bounds = array<i64: 128, 128>}, {transform_indices = @transform_2, window_bounds = array<i64: 1, 128>}, {transform_indices = @transform_3, window_bounds = array<i64: 512, 128>}]} {
    %c0 = arith.constant 0 : index
    %c0_0 = arith.constant 0 : index
    %0 = vector.load %arg2[%c0, %c0_0] : memref<512x128xbf16, #tpu.memory_space<vmem>>, vector<512x128xbf16>
    %c0_1 = arith.constant 0 : index
    %c0_2 = arith.constant 0 : index
    %1 = vector.load %arg3[%c0_1, %c0_2] : memref<128x128xbf16, #tpu.memory_space<vmem>>, vector<128x128xbf16>
    %cst = arith.constant dense<0.000000e+00> : vector<512x128xf32>
    %2 = tpu.matmul %0, %1, %cst {dimension_numbers = #tpu.dot_dimension_numbers<[1], [0], [0], [1], [0, 0, 1, 1], [], []>} : vector<512x128xbf16>, vector<128x128xbf16>, vector<512x128xf32> -> vector<512x128xf32>
    %c0_3 = arith.constant 0 : index
    %c0_4 = arith.constant 0 : index
    %3 = vector.load %arg4[%c0_3, %c0_4] : memref<1x128xf32, #tpu.memory_space<vmem>>, vector<1x128xf32>
    %4 = vector.broadcast %3 : vector<1x128xf32> to vector<512x128xf32>
    %5 = arith.addf %2, %4 : vector<512x128xf32>
    %6 = arith.negf %5 : vector<512x128xf32>
    %7 = math.exp %6 : vector<512x128xf32>
    %cst_5 = arith.constant 1.000000e+00 : f32
    %8 = vector.broadcast %cst_5 : f32 to vector<512x128xf32>
    %9 = arith.addf %8, %7 : vector<512x128xf32>
    %10 = arith.divf %8, %9 : vector<512x128xf32>
    %11 = arith.mulf %5, %10 : vector<512x128xf32>
    %c0_6 = arith.constant 0 : index
    %c0_7 = arith.constant 0 : index
    %12 = vector.load %arg5[%c0_6, %c0_7] : memref<512x128xf32, #tpu.memory_space<vmem>>, vector<512x128xf32>
    tpu.vector_store %arg5[%c0_6, %c0_7], %11 {strides = array<i32>} : memref<512x128xf32, #tpu.memory_space<vmem>>, vector<512x128xf32>,
    return
  }
  func.func @transform_0(%arg0: i32, %arg1: i32) -> (i32, i32) {
    %c0_i32 = arith.constant 0 : i32
    %c0_i32_0 = arith.constant 0 : i32
    return %arg0, %c0_i32 : i32, i32
  }
  func.func @transform_1(%arg0: i32, %arg1: i32) -> (i32, i32) {
    %c0_i32 = arith.constant 0 : i32
    %c0_i32_0 = arith.constant 0 : i32
    return %c0_i32, %arg1 : i32, i32
  }
  func.func @transform_2(%arg0: i32, %arg1: i32) -> (i32, i32) {
    %c0_i32 = arith.constant 0 : i32
    %c0_i32_0 = arith.constant 0 : i32
    return %c0_i32, %arg1 : i32, i32
  }
  func.func @transform_3(%arg0: i32, %arg1: i32) -> (i32, i32) {
    %c0_i32 = arith.constant 0 : i32
    return %arg0, %arg1 : i32, i32
  }
}

</mosaic_0001>

<bundles_post_ra>
// kernel: tpu_custom_call.1
= control target key start
LH: loop header
LB: loop body
LE: loop exit
PB: predicated region body
PF: predicated region fallthrough
CT: control target
= control target key end

     0   :  { %8 = vsyncpa [#allocation3], 0  ;;  %s2176_s0 = inlined_call_operand.hbm [shape: bf16[512,128], index: 0, kind: input, shape index: {}]   ;;  %s2177_s1 = inlined_call_operand.hbm [shape: bf16[128,128], index: 1, kind: input, shape index: {}]   ;;  %s2178_s2 = inlined_call_operand.vmem [shape: f32[1,128], index: 2, kind: input, shape index: {}]   ;;  %s2179_s3 = inlined_call_operand.hbm [shape: f32[512,128], index: 3, kind: output, shape index: {}]  }
   0x1   :  { %9 = vsyncpa [#allocation6], 0 }
   0x2   :  { %10 = vsyncpa [#allocation4], 0  ;;  %s1801_s12 = smov [#allocation2]  }
   0x3   :  { %s16_s13 = sshll.u32 %s1801_s12, 4  ;;  %s17_s13 = int_to_ptr.vmem [resolvable:$true] %s16_s13 }
   0x4   :  { %s1743_s14 = scalar_lea.vmem %s17_s13, 4096  ;;  %p1748_p1 = scmp.lt.s32.totalorder %s17_s13, %s17_s13 }
   0x5   :  { %p1744_p0 = scmp.ne.s32.totalorder %s17_s13, %s1743_s14  ;;  %p1749_p2 = scmp.lt.s32.totalorder %s1743_s14, %s1743_s14 }
   0x7   :  { %p1750_p3 = por %p1749_p2, %p1748_p1 }
   0x9   :  { %p1751_p4 = pnand %p1750_p3, %p1744_p0 }
   0xb   :  { %1754 = shalt.err (!%p1751_p4)
}
   0xc   :  { %s1802_s15 = smov 64   ;;  %s1803_s16 = smov 4  }
   0xd   :  { %22 = dma.hbm_to_vmem [thread:$0]  %s2176_s0, 4096, %s17_s13, [#allocation3], %s1802_s15, %s1802_s15, %s1803_s16  }
   0xe   :  { %s1804_s19 = smov [#allocation5]  }
   0xf   :  { %s28_s20 = sshll.u32 %s1804_s19, 4  ;;  %s29_s20 = int_to_ptr.vmem [resolvable:$true] %s28_s20 }
  0x10   :  { %s1763_s21 = scalar_lea.vmem %s29_s20, 1024  ;;  %p1768_p6 = scmp.lt.s32.totalorder %s29_s20, %s29_s20 }
  0x11   :  { %p1764_p5 = scmp.ne.s32.totalorder %s29_s20, %s1763_s21  ;;  %p1769_p7 = scmp.lt.s32.totalorder %s1763_s21, %s1763_s21 }
  0x13   :  { %p1770_p8 = por %p1769_p7, %p1768_p6 }
  0x15   :  { %p1771_p9 = pnand %p1770_p8, %p1764_p5 }
  0x17   :  { %1774 = shalt.err (!%p1771_p9)
}
  0x18   :  { %34 = dma.hbm_to_vmem [thread:$0]  %s2177_s1, 1024, %s29_s20, [#allocation6], %s1802_s15, %s1802_s15, %s1803_s16  }
  0x19   :  { %1795 = dma.done.wait [#allocation3], 4096  }
  0x1a   :  { %1796 = vsyncadd [#allocation3], 4294963200 }
  0x1b   :  { %1797 = dma.done.wait [#allocation6], 1024  }
  0x1c   :  { %1798 = vsyncadd [#allocation6], 4294966272  ;;  %v1438_v0 = vld [vmem:[#allocation5 + $0x38] sm:$0xff]   ;;  %v1439_v1 = vld [vmem:[#allocation5 + $0x30] sm:$0xff]  }
  0x1d   :  { %1335 = vmatprep.subr.bf16.mxu0 %v1438_v0  ;;  %1415 = vmatprep.subr.bf16.mxu1 %v1438_v0  ;;  %v1440_v2 = vld [vmem:[#allocation5 + $0x28] sm:$0xff]   ;;  %v1441_v3 = vld [vmem:[#allocation5 + $0x20] sm:$0xff]   ;;  %v1442_v6 = vld [vmem:[#allocation5 + $0x18] sm:$0xff]  }
  0x1e   :  { %1336 = vmatpush3.bf16.msra.mxu0 %v1438_v0  ;;  %1423 = vmatpush3.bf16.msra.mxu1 %v1438_v0  ;;  %v1446_v4 = vld [vmem:[#allocation2] sm:$0xff]   ;;  %v1443_v7 = vld [vmem:[#allocation5 + $0x10] sm:$0xff]   ;;  %v1444_v8 = vld [vmem:[#allocation5 + $0x8] sm:$0xff]  }
  0x1f   :  { %1337 = vmatprep.subr.bf16.mxu0 %v1439_v1  ;;  %1416 = vmatprep.subr.bf16.mxu1 %v1439_v1  ;;  %v1447_v5 = vld [vmem:[#allocation2 + $0x80] sm:$0xff]   ;;  %v1448_v10 = vld [vmem:[#allocation2 + $0x8] sm:$0xff]   ;;  %v1450_v12 = vld [vmem:[#allocation2 + $0x10] sm:$0xff]  }
  0x20   :  { %1351 = vmatprep.mubr.bf16.mxu0 %v1446_v4  ;;  %1383 = vmatprep.mubr.bf16.mxu1 %v1447_v5  ;;  %v1445_v9 = vld [vmem:[#allocation5] sm:$0xff]   ;;  %v1449_v11 = vld [vmem:[#allocation2 + $0x88] sm:$0xff]   ;;  %v1451_v13 = vld [vmem:[#allocation2 + $0x90] sm:$0xff]  }
  0x21   :  { %v1452_v14 = vld [vmem:[#allocation2 + $0x18] sm:$0xff]   ;;  %v1454_v16 = vld [vmem:[#allocation2 + $0x20] sm:$0xff]   ;;  %v1456_v18 = vld [vmem:[#allocation2 + $0x28] sm:$0xff]  }
  0x22   :  { %1338 = vmatpush3.bf16.msra.mxu0 %v1439_v1  ;;  %1424 = vmatpush3.bf16.msra.mxu1 %v1439_v1  ;;  %v1453_v15 = vld [vmem:[#allocation2 + $0x98] sm:$0xff]   ;;  %v1455_v17 = vld [vmem:[#allocation2 + $0xa0] sm:$0xff]   ;;  %v1457_v19 = vld [vmem:[#allocation2 + $0xa8] sm:$0xff]  }
  0x23   :  { %1339 = vmatprep.subr.bf16.mxu0 %v1440_v2  ;;  %1417 = vmatprep.subr.bf16.mxu1 %v1440_v2  ;;  %v1458_v20 = vld [vmem:[#allocation2 + $0x30] sm:$0xff]   ;;  %v1460_v22 = vld [vmem:[#allocation2 + $0x38] sm:$0xff]   ;;  %v1462_v24 = vld [vmem:[#allocation2 + $0x40] sm:$0xff]  }
  0x24   :  { %v1459_v21 = vld [vmem:[#allocation2 + $0xb0] sm:$0xff]   ;;  %v1461_v23 = vld [vmem:[#allocation2 + $0xb8] sm:$0xff]   ;;  %v1463_v25 = vld [vmem:[#allocation2 + $0xc0] sm:$0xff]  }
  0x25   :  { %v1464_v26 = vld [vmem:[#allocation2 + $0x48] sm:$0xff]   ;;  %v1466_v28 = vld [vmem:[#allocation2 + $0x50] sm:$0xff]   ;;  %v1468_v30 = vld [vmem:[#allocation2 + $0x58] sm:$0xff]  }
  0x26   :  { %1340 = vmatpush3.bf16.msra.mxu0 %v1440_v2  ;;  %1425 = vmatpush3.bf16.msra.mxu1 %v1440_v2  ;;  %v1465_v27 = vld [vmem:[#allocation2 + $0xc8] sm:$0xff]   ;;  %v1467_v29 = vld [vmem:[#allocation2 + $0xd0] sm:$0xff]   ;;  %v1469_v31 = vld [vmem:[#allocation2 + $0xd8] sm:$0xff]  }
  0x27   :  { %1341 = vmatprep.subr.bf16.mxu0 %v1441_v3  ;;  %1418 = vmatprep.subr.bf16.mxu1 %v1441_v3  ;;  %v1470_v32 = vld [vmem:[#allocation2 + $0x60] sm:$0xff]   ;;  %v1472_v34 = vld [vmem:[#allocation2 + $0x68] sm:$0xff]   ;;  %v1474_v36 = vld [vmem:[#allocation2 + $0x70] sm:$0xff]  }
  0x28   :  { %v1471_v33 = vld [vmem:[#allocation2 + $0xe0] sm:$0xff]   ;;  %v1473_v35 = vld [vmem:[#allocation2 + $0xe8] sm:$0xff]   ;;  %v1475_v37 = vld [vmem:[#allocation2 + $0xf0] sm:$0xff]  }
  0x29   :  { %v1476_v38 = vld [vmem:[#allocation2 + $0x78] sm:$0xff]   ;;  %v1837_v40 = vld [vmem:[%s2178_s2] ss:$0 sm:$0xff] }
  0x2a   :  { %1342 = vmatpush3.bf16.msra.mxu0 %v1441_v3  ;;  %1426 = vmatpush3.bf16.msra.mxu1 %v1441_v3  ;;  %v1477_v39 = vld [vmem:[#allocation2 + $0xf8] sm:$0xff]  }
  0x2b   :  { %1343 = vmatprep.subr.bf16.mxu0 %v1442_v6  ;;  %1419 = vmatprep.subr.bf16.mxu1 %v1442_v6 }
  0x2e   :  { %1344 = vmatpush3.bf16.msra.mxu0 %v1442_v6  ;;  %1427 = vmatpush3.bf16.msra.mxu1 %v1442_v6 }
  0x2f   :  { %1345 = vmatprep.subr.bf16.mxu0 %v1443_v7  ;;  %1420 = vmatprep.subr.bf16.mxu1 %v1443_v7 }
  0x32   :  { %1346 = vmatpush3.bf16.msra.mxu0 %v1443_v7  ;;  %1428 = vmatpush3.bf16.msra.mxu1 %v1443_v7 }
  0x33   :  { %1347 = vmatprep.subr.bf16.mxu0 %v1444_v8  ;;  %1421 = vmatprep.subr.bf16.mxu1 %v1444_v8 }
  0x36   :  { %1348 = vmatpush3.bf16.msra.mxu0 %v1444_v8  ;;  %1429 = vmatpush3.bf16.msra.mxu1 %v1444_v8 }
  0x37   :  { %1349 = vmatprep.subr.bf16.mxu0 %v1445_v9  ;;  %1422 = vmatprep.subr.bf16.mxu1 %v1445_v9 }
  0x3a   :  { %1350 = vmatpush3.bf16.msra.mxu0 %v1445_v9  ;;  %1430 = vmatpush3.bf16.msra.mxu1 %v1445_v9 }
  0x3d   :  { %1352 = vmatmul.mubr.bf16.vlgmr.msra.gmra.mxu0 %v1448_v10  ;;  %1384 = vmatmul.mubr.bf16.vlgmr.msra.gmra.mxu1 %v1449_v11 }
  0x3e   :  { %1355 = vmatprep.mubr.bf16.mxu0 %v1450_v12  ;;  %1387 = vmatprep.mubr.bf16.mxu1 %v1451_v13 }
  0x45   :  { %1356 = vmatmul.mubr.bf16.gmra.mxu0 %v1452_v14  ;;  %1388 = vmatmul.mubr.bf16.gmra.mxu1 %v1453_v15 }
  0x46   :  { %1359 = vmatprep.mubr.bf16.mxu0 %v1454_v16  ;;  %1391 = vmatprep.mubr.bf16.mxu1 %v1455_v17 }
  0x4d   :  { %1360 = vmatmul.mubr.bf16.gmra.mxu0 %v1456_v18  ;;  %1392 = vmatmul.mubr.bf16.gmra.mxu1 %v1457_v19 }
  0x4e   :  { %1363 = vmatprep.mubr.bf16.mxu0 %v1458_v20  ;;  %1395 = vmatprep.mubr.bf16.mxu1 %v1459_v21 }
  0x55   :  { %1364 = vmatmul.mubr.bf16.gmra.mxu0 %v1460_v22  ;;  %1396 = vmatmul.mubr.bf16.gmra.mxu1 %v1461_v23 }
  0x56   :  { %1367 = vmatprep.mubr.bf16.mxu0 %v1462_v24  ;;  %1399 = vmatprep.mubr.bf16.mxu1 %v1463_v25 }
  0x5d   :  { %1368 = vmatmul.mubr.bf16.gmra.mxu0 %v1464_v26  ;;  %1400 = vmatmul.mubr.bf16.gmra.mxu1 %v1465_v27 }
  0x5e   :  { %1371 = vmatprep.mubr.bf16.mxu0 %v1466_v28  ;;  %1403 = vmatprep.mubr.bf16.mxu1 %v1467_v29 }
  0x65   :  { %1372 = vmatmul.mubr.bf16.gmra.mxu0 %v1468_v30  ;;  %1404 = vmatmul.mubr.bf16.gmra.mxu1 %v1469_v31 }
  0x66   :  { %1375 = vmatprep.mubr.bf16.mxu0 %v1470_v32  ;;  %1407 = vmatprep.mubr.bf16.mxu1 %v1471_v33 }
  0x6d   :  { %1376 = vmatmul.mubr.bf16.gmra.mxu0 %v1472_v34  ;;  %1408 = vmatmul.mubr.bf16.gmra.mxu1 %v1473_v35 }
  0x6e   :  { %1379 = vmatprep.mubr.bf16.mxu0 %v1474_v36  ;;  %1411 = vmatprep.mubr.bf16.mxu1 %v1475_v37 }
  0x75   :  { %1380 = vmatmul.mubr.bf16.gmra.mxu0 %v1476_v38  ;;  %1412 = vmatmul.mubr.bf16.gmra.mxu1 %v1477_v39 }
  0xfd   :  { %v1353_v41 = vpop.f32.mrf.mxu0  ;;  %v1385_v42 = vpop.f32.mrf.mxu1 }
  0xfe   :  { %v1840_v43 = vadd.f32 %v1353_v41, %v1837_v40  ;;  %v1843_v44 = vadd.f32 %v1385_v42, %v1837_v40 }
  0xff   :  { %v405_v45 = vpop.f32.mrf.mxu0  ;;  %v533_v46 = vpop.f32.mrf.mxu1 }
 0x100   :  { %v1233_v47 = vmul.f32 -1.442695, %v1840_v43  ;;  %v1265_v48 = vmul.f32 -1.442695, %v1843_v44  ;;  %v1848_v49 = vadd.f32 %v1837_v40, %v405_v45  ;;  %v1851_v50 = vadd.f32 %v1837_v40, %v533_v46 }
 0x101   :  { %v1354_v51 = vpop.f32.mrf.mxu0  ;;  %v1386_v52 = vpop.f32.mrf.mxu1 }
 0x102   :  { %1478 = vpow2.f32 %v1233_v47  ;;  %v1231_v53 = vmul.f32 -1.442695, %v1848_v49  ;;  %v1263_v54 = vmul.f32 -1.442695, %v1851_v50  ;;  %v1856_v55 = vadd.f32 %v1354_v51, %v1837_v40 }
 0x103   :  { %1480 = vpow2.f32 %v1265_v48  ;;  %v1859_v56 = vadd.f32 %v1386_v52, %v1837_v40  ;;  %v408_v57 = vpop.f32.mrf.mxu0  ;;  %v536_v58 = vpop.f32.mrf.mxu1 }
 0x104   :  { %1482 = vpow2.f32 %v1231_v53  ;;  %v1234_v59 = vmul.f32 -1.442695, %v1856_v55  ;;  %v1863_v60 = vadd.f32 %v1837_v40, %v408_v57  ;;  %v1866_v61 = vadd.f32 %v1837_v40, %v536_v58 }
 0x105   :  { %1484 = vpow2.f32 %v1263_v54  ;;  %v1266_v62 = vmul.f32 -1.442695, %v1859_v56  ;;  %v1357_v63 = vpop.f32.mrf.mxu0  ;;  %v1389_v0 = vpop.f32.mrf.mxu1 }
 0x106   :  { %1486 = vpow2.f32 %v1234_v59  ;;  %v1232_v1 = vmul.f32 -1.442695, %v1863_v60  ;;  %v1264_v2 = vmul.f32 -1.442695, %v1866_v61  ;;  %v1872_v3 = vadd.f32 %v1357_v63, %v1837_v40 }
 0x107   :  { %1488 = vpow2.f32 %v1266_v62  ;;  %v1875_v4 = vadd.f32 %v1389_v0, %v1837_v40  ;;  %v421_v5 = vpop.f32.mrf.mxu0  ;;  %v549_v6 = vpop.f32.mrf.mxu1 }
 0x108   :  { %1490 = vpow2.f32 %v1232_v1  ;;  %v1237_v7 = vmul.f32 -1.442695, %v1872_v3  ;;  %v1879_v8 = vadd.f32 %v1837_v40, %v421_v5  ;;  %v1882_v9 = vadd.f32 %v1837_v40, %v549_v6 }
 0x109   :  { %1492 = vpow2.f32 %v1264_v2  ;;  %v1269_v10 = vmul.f32 -1.442695, %v1875_v4  ;;  %v1358_v11 = vpop.f32.mrf.mxu0  ;;  %v1390_v12 = vpop.f32.mrf.mxu1 }
 0x10a   :  { %1494 = vpow2.f32 %v1237_v7  ;;  %v1235_v13 = vmul.f32 -1.442695, %v1879_v8  ;;  %v1267_v14 = vmul.f32 -1.442695, %v1882_v9  ;;  %v1888_v15 = vadd.f32 %v1358_v11, %v1837_v40 }
 0x10b   :  { %1496 = vpow2.f32 %v1269_v10  ;;  %v1891_v16 = vadd.f32 %v1390_v12, %v1837_v40  ;;  %v424_v17 = vpop.f32.mrf.mxu0  ;;  %v552_v18 = vpop.f32.mrf.mxu1 }
 0x10c   :  { %1498 = vpow2.f32 %v1235_v13  ;;  %v1238_v19 = vmul.f32 -1.442695, %v1888_v15  ;;  %v1895_v20 = vadd.f32 %v1837_v40, %v424_v17  ;;  %v1898_v21 = vadd.f32 %v1837_v40, %v552_v18 }
 0x10d   :  { %1500 = vpow2.f32 %v1267_v14  ;;  %v1270_v22 = vmul.f32 -1.442695, %v1891_v16  ;;  %v1361_v23 = vpop.f32.mrf.mxu0  ;;  %v1393_v24 = vpop.f32.mrf.mxu1 }
 0x10e   :  { %1502 = vpow2.f32 %v1238_v19  ;;  %v1236_v25 = vmul.f32 -1.442695, %v1895_v20  ;;  %v1268_v26 = vmul.f32 -1.442695, %v1898_v21  ;;  %v1904_v2 = vadd.f32 %v1361_v23, %v1837_v40 }
 0x10f   :  { %v1479_v27 = vpop.eup %1478  ;;  %1504 = vpow2.f32 %v1270_v22  ;;  %v437_v28 = vpop.f32.mrf.mxu0  ;;  %v1907_v10 = vadd.f32 %v1393_v24, %v1837_v40 }
 0x110   :  { %v565_v29 = vpop.f32.mrf.mxu1  ;;  %v1481_v30 = vpop.eup %1480  ;;  %v854_v31 = vadd.f32 1.0, %v1479_v27  ;;  %1506 = vpow2.f32 %v1236_v25  ;;  %v1910_v13 = vadd.f32 %v1837_v40, %v437_v28  ;;  %v1241_v25 = vmul.f32 -1.442695, %v1904_v2 }
 0x111   :  { %v1483_v32 = vpop.eup %1482  ;;  %v886_v33 = vadd.f32 1.0, %v1481_v30  ;;  %1508 = vpow2.f32 %v1268_v26  ;;  %v1362_v34 = vpop.f32.mrf.mxu0  ;;  %v1913_v18 = vadd.f32 %v1837_v40, %v565_v29  ;;  %v1273_v30 = vmul.f32 -1.442695, %v1907_v10 }
 0x112   :  { %v1485_v35 = vpop.eup %1484  ;;  %1510 = vrcp.f32 %v854_v31  ;;  %v852_v36 = vadd.f32 1.0, %v1483_v32  ;;  %v1394_v37 = vpop.f32.mrf.mxu1  ;;  %v1917_v24 = vadd.f32 %v1362_v34, %v1837_v40 }
 0x113   :  { %v1487_v38 = vpop.eup %1486  ;;  %1512 = vrcp.f32 %v886_v33  ;;  %v884_v39 = vadd.f32 1.0, %v1485_v35  ;;  %v440_v47 = vpop.f32.mrf.mxu0  ;;  %v1921_v31 = vadd.f32 %v1394_v37, %v1837_v40  ;;  %v1239_v33 = vmul.f32 -1.442695, %v1910_v13 }
 0x114   :  { %v1489_v41 = vpop.eup %1488  ;;  %1514 = vrcp.f32 %v852_v36  ;;  %v855_v42 = vadd.f32 1.0, %v1487_v38  ;;  %v568_v52 = vpop.f32.mrf.mxu1  ;;  %v1926_v35 = vadd.f32 %v1837_v40, %v440_v47  ;;  %v1271_v38 = vmul.f32 -1.442695, %v1913_v18 }
 0x115   :  { %v1491_v45 = vpop.eup %1490  ;;  %1516 = vrcp.f32 %v884_v39  ;;  %v887_v46 = vadd.f32 1.0, %v1489_v41  ;;  %v1365_v63 = vpop.f32.mrf.mxu0  ;;  %v1931_v39 = vadd.f32 %v1837_v40, %v568_v52 }
 0x116   :  { %v1493_v48 = vpop.eup %1492  ;;  %1518 = vrcp.f32 %v855_v42  ;;  %v853_v51 = vadd.f32 1.0, %v1491_v45  ;;  %v1397_v5 = vpop.f32.mrf.mxu1  ;;  %v1242_v42 = vmul.f32 -1.442695, %v1917_v24  ;;  %v1936_v45 = vadd.f32 %v1365_v63, %v1837_v40 }
 0x117   :  { %v1495_v53 = vpop.eup %1494  ;;  %1520 = vrcp.f32 %v887_v46  ;;  %v885_v54 = vadd.f32 1.0, %v1493_v48  ;;  %v453_v19 = vpop.f32.mrf.mxu0  ;;  %v1274_v48 = vmul.f32 -1.442695, %v1921_v31 }
 0x118   :  { %v1497_v57 = vpop.eup %1496  ;;  %1522 = vrcp.f32 %v853_v51  ;;  %v858_v58 = vadd.f32 1.0, %v1495_v53  ;;  %v581_v26 = vpop.f32.mrf.mxu1  ;;  %v1941_v51 = vadd.f32 %v1397_v5, %v1837_v40  ;;  %v1240_v53 = vmul.f32 -1.442695, %v1926_v35 }
 0x119   :  { %v1499_v59 = vpop.eup %1498  ;;  %1524 = vrcp.f32 %v885_v54  ;;  %v890_v62 = vadd.f32 1.0, %v1497_v57  ;;  %v1366_v37 = vpop.f32.mrf.mxu0  ;;  %v1946_v54 = vadd.f32 %v1837_v40, %v453_v19 }
 0x11a   :  { %v1501_v0 = vpop.eup %1500  ;;  %1526 = vrcp.f32 %v858_v58  ;;  %v856_v1 = vadd.f32 1.0, %v1499_v59  ;;  %v1398_v46 = vpop.f32.mrf.mxu1  ;;  %v1272_v58 = vmul.f32 -1.442695, %v1931_v39  ;;  %v1951_v59 = vadd.f32 %v1837_v40, %v581_v26 }
 0x11b   :  { %v1503_v6 = vpop.eup %1502  ;;  %1528 = vrcp.f32 %v890_v62  ;;  %v888_v7 = vadd.f32 1.0, %v1501_v0  ;;  %v456_v62 = vpop.f32.mrf.mxu0  ;;  %v1245_v0 = vmul.f32 -1.442695, %v1936_v45 }
 0x11c   :  { %v1505_v11 = vpop.eup %1504  ;;  %1530 = vrcp.f32 %v856_v1  ;;  %v859_v12 = vadd.f32 1.0, %v1503_v6  ;;  %v1956_v1 = vadd.f32 %v1366_v37, %v1837_v40  ;;  %v584_v5 = vpop.f32.mrf.mxu1 }
 0x11d   :  { %v1507_v14 = vpop.eup %1506  ;;  %1532 = vrcp.f32 %v888_v7  ;;  %v891_v17 = vadd.f32 1.0, %v1505_v11  ;;  %v1277_v7 = vmul.f32 -1.442695, %v1941_v51  ;;  %v1961_v11 = vadd.f32 %v1398_v46, %v1837_v40 }
 0x11e   :  { %v1509_v22 = vpop.eup %1508  ;;  %1534 = vrcp.f32 %v859_v12  ;;  %v857_v23 = vadd.f32 1.0, %v1507_v14  ;;  %v1243_v14 = vmul.f32 -1.442695, %v1946_v54 }
 0x11f   :  { %v1511_v27 = vpop.eup %1510  ;;  %1536 = vrcp.f32 %v891_v17  ;;  %v889_v28 = vadd.f32 1.0, %v1509_v22  ;;  %v1966_v17 = vadd.f32 %v1837_v40, %v456_v62  ;;  %v1275_v22 = vmul.f32 -1.442695, %v1951_v59 }
 0x120   :  { %v1513_v29 = vpop.eup %1512  ;;  %v1046_v32 = vmul.f32 %v1511_v27, %v1840_v43  ;;  %1538 = vrcp.f32 %v857_v23  ;;  %v1971_v23 = vadd.f32 %v1837_v40, %v584_v5  ;;  %v1246_v27 = vmul.f32 -1.442695, %v1956_v1 }
 0x121   :  { %v1515_v34 = vpop.eup %1514  ;;  %v1078_v36 = vmul.f32 %v1513_v29, %v1843_v44  ;;  %1540 = vrcp.f32 %v889_v28  ;;  %v1977_v28 = vpop.f32.mrf.mxu1  ;;  %v1278_v29 = vmul.f32 -1.442695, %v1961_v11 }
 0x122   :  { %v1517_v41 = vpop.eup %1516  ;;  %1110 = vst [vmem:[#allocation7 + $0x10] sm:$0xff] %v1046_v32  ;;  %v1044_v43 = vmul.f32 %v1515_v34, %v1848_v49  ;;  %1542 = vpow2.f32 %v1241_v25  ;;  %v1973_v25 = vpop.f32.mrf.mxu0  ;;  %v1244_v34 = vmul.f32 -1.442695, %v1966_v17 }
 0x123   :  { %v1519_v47 = vpop.eup %1518  ;;  %1142 = vst [vmem:[#allocation7 + $0x110] sm:$0xff] %v1078_v36  ;;  %v1076_v44 = vmul.f32 %v1517_v41, %v1851_v50  ;;  %1544 = vpow2.f32 %v1273_v30 }
 0x124   :  { %v1521_v52 = vpop.eup %1520  ;;  %1108 = vst [vmem:[#allocation7] sm:$0xff] %v1044_v43  ;;  %v1047_v49 = vmul.f32 %v1519_v47, %v1856_v55  ;;  %1546 = vpow2.f32 %v1239_v33  ;;  %v469_v37 = vpop.f32.mrf.mxu0 }
 0x125   :  { %v1523_v57 = vpop.eup %1522  ;;  %1140 = vst [vmem:[#allocation7 + $0x100] sm:$0xff] %v1076_v44  ;;  %v1079_v50 = vmul.f32 %v1521_v52, %v1859_v56  ;;  %1548 = vpow2.f32 %v1271_v38  ;;  %v1276_v38 = vmul.f32 -1.442695, %v1971_v23  ;;  %v597_v43 = vpop.f32.mrf.mxu1 }
 0x126   :  { %v1525_v63 = vpop.eup %1524  ;;  %1111 = vst [vmem:[#allocation7 + $0x18] sm:$0xff] %v1047_v49  ;;  %v1045_v55 = vmul.f32 %v1523_v57, %v1863_v60  ;;  %1550 = vpow2.f32 %v1242_v42 }
 0x127   :  { %v1527_v6 = vpop.eup %1526  ;;  %1143 = vst [vmem:[#allocation7 + $0x118] sm:$0xff] %v1079_v50  ;;  %v1077_v56 = vmul.f32 %v1525_v63, %v1866_v61  ;;  %1552 = vpow2.f32 %v1274_v48  ;;  %v1370_v48 = vpop.f32.mrf.mxu0 }
 0x128   :  { %v1529_v12 = vpop.eup %1528  ;;  %1109 = vst [vmem:[#allocation7 + $0x8] sm:$0xff] %v1045_v55  ;;  %v1050_v60 = vmul.f32 %v1527_v6, %v1872_v3  ;;  %1554 = vpow2.f32 %v1240_v53 }
 0x129   :  { %v1531_v19 = vpop.eup %1530  ;;  %1141 = vst [vmem:[#allocation7 + $0x108] sm:$0xff] %v1077_v56  ;;  %v1082_v61 = vmul.f32 %v1529_v12, %v1875_v4  ;;  %1556 = vpow2.f32 %v1272_v58  ;;  %v472_v63 = vpop.f32.mrf.mxu0 }
 0x12a   :  { %v1533_v26 = vpop.eup %1532  ;;  %1114 = vst [vmem:[#allocation7 + $0x30] sm:$0xff] %v1050_v60  ;;  %v1048_v3 = vmul.f32 %v1531_v19, %v1879_v8  ;;  %1558 = vpow2.f32 %v1245_v0 }
 0x12b   :  { %v1535_v30 = vpop.eup %1534  ;;  %1146 = vst [vmem:[#allocation7 + $0x130] sm:$0xff] %v1082_v61  ;;  %v1080_v4 = vmul.f32 %v1533_v26, %v1882_v9  ;;  %1560 = vpow2.f32 %v1277_v7  ;;  %v1373_v19 = vpop.f32.mrf.mxu0  ;;  %v1989_v26 = vadd.f32 %v1973_v25, %v1837_v40  ;;  %v1999_v25 = vadd.f32 %v1837_v40, %v597_v43 }
 0x12c   :  { %v1537_v32 = vpop.eup %1536  ;;  %1112 = vst [vmem:[#allocation7 + $0x20] sm:$0xff] %v1048_v3  ;;  %v1051_v33 = vmul.f32 %v1535_v30, %v1888_v15  ;;  %1562 = vpow2.f32 %v1243_v14 }
 0x12d   :  { %v1539_v8 = vpop.eup %1538  ;;  %1144 = vst [vmem:[#allocation7 + $0x120] sm:$0xff] %v1080_v4  ;;  %v1083_v36 = vmul.f32 %v1537_v32, %v1891_v16  ;;  %1564 = vpow2.f32 %v1275_v22  ;;  %v1993_v4 = vadd.f32 %v1977_v28, %v1837_v40  ;;  %v2003_v28 = vadd.f32 %v1370_v48, %v1837_v40 }
 0x12e   :  { %v1541_v41 = vpop.eup %1540  ;;  %1115 = vst [vmem:[#allocation7 + $0x38] sm:$0xff] %v1051_v33  ;;  %v1049_v9 = vmul.f32 %v1539_v8, %v1895_v20  ;;  %1566 = vpow2.f32 %v1246_v27  ;;  %v1402_v20 = vpop.f32.mrf.mxu1  ;;  %v1996_v33 = vadd.f32 %v1837_v40, %v469_v37 }
 0x12f   :  { %v1543_v42 = vpop.eup %1542  ;;  %1147 = vst [vmem:[#allocation7 + $0x138] sm:$0xff] %v1083_v36  ;;  %v1081_v15 = vmul.f32 %v1541_v41, %v1898_v21  ;;  %1568 = vpow2.f32 %v1278_v29  ;;  %v485_v36 = vpop.f32.mrf.mxu0 }
 0x130   :  { %v1545_v46 = vpop.eup %1544  ;;  %1113 = vst [vmem:[#allocation7 + $0x28] sm:$0xff] %v1049_v9  ;;  %v862_v47 = vadd.f32 1.0, %v1543_v42  ;;  %1570 = vpow2.f32 %v1244_v34  ;;  %v600_v5 = vpop.f32.mrf.mxu1  ;;  %v1249_v9 = vmul.f32 -1.442695, %v1989_v26 }
 0x131   :  { %v1547_v16 = vpop.eup %1546  ;;  %1145 = vst [vmem:[#allocation7 + $0x128] sm:$0xff] %v1081_v15  ;;  %v894_v44 = vadd.f32 1.0, %v1545_v46  ;;  %1572 = vpow2.f32 %v1276_v38  ;;  %v1281_v46 = vmul.f32 -1.442695, %v1993_v4 }
 0x132   :  { %v1549_v52 = vpop.eup %1548  ;;  %1574 = vrcp.f32 %v862_v47  ;;  %v860_v49 = vadd.f32 1.0, %v1547_v16  ;;  %v1405_v3 = vpop.f32.mrf.mxu1  ;;  %v2007_v47 = vadd.f32 %v1402_v20, %v1837_v40 }
 0x133   :  { %v1551_v53 = vpop.eup %1550  ;;  %1576 = vrcp.f32 %v894_v44  ;;  %v892_v57 = vadd.f32 1.0, %v1549_v52  ;;  %v1247_v44 = vmul.f32 -1.442695, %v1996_v33  ;;  %v2012_v52 = vadd.f32 %v1837_v40, %v472_v63  ;;  %v1374_v20 = vpop.f32.mrf.mxu0 }
 0x134   :  { %v1553_v50 = vpop.eup %1552  ;;  %1578 = vrcp.f32 %v860_v49  ;;  %v863_v21 = vadd.f32 1.0, %v1551_v53  ;;  %v613_v42 = vpop.f32.mrf.mxu1  ;;  %v1279_v53 = vmul.f32 -1.442695, %v1999_v25 }
 0x135   :  { %v1555_v58 = vpop.eup %1554  ;;  %1580 = vrcp.f32 %v892_v57  ;;  %v895_v62 = vadd.f32 1.0, %v1553_v50  ;;  %v2017_v57 = vadd.f32 %v1837_v40, %v600_v5 }
 0x136   :  { %v1557_v55 = vpop.eup %1556  ;;  %1582 = vrcp.f32 %v863_v21  ;;  %v861_v0 = vadd.f32 1.0, %v1555_v58  ;;  %v1250_v21 = vmul.f32 -1.442695, %v2003_v28  ;;  %v2022_v58 = vadd.f32 %v1373_v19, %v1837_v40 }
 0x137   :  { %v1559_v6 = vpop.eup %1558  ;;  %1584 = vrcp.f32 %v895_v62  ;;  %v893_v56 = vadd.f32 1.0, %v1557_v55  ;;  %v1406_v62 = vpop.f32.mrf.mxu1  ;;  %v1282_v55 = vmul.f32 -1.442695, %v2007_v47 }
 0x138   :  { %v1561_v7 = vpop.eup %1560  ;;  %1586 = vrcp.f32 %v861_v0  ;;  %v866_v12 = vadd.f32 1.0, %v1559_v6  ;;  %v2027_v0 = vadd.f32 %v1405_v3, %v1837_v40  ;;  %v1248_v6 = vmul.f32 -1.442695, %v2012_v52 }
 0x139   :  { %v1563_v60 = vpop.eup %1562  ;;  %1588 = vrcp.f32 %v893_v56  ;;  %v898_v14 = vadd.f32 1.0, %v1561_v7  ;;  %v2032_v56 = vadd.f32 %v1837_v40, %v485_v36  ;;  %v616_v3 = vpop.f32.mrf.mxu1 }
 0x13a   :  { %v1565_v61 = vpop.eup %1564  ;;  %1590 = vrcp.f32 %v866_v12  ;;  %v864_v22 = vadd.f32 1.0, %v1563_v60  ;;  %v1280_v12 = vmul.f32 -1.442695, %v2017_v57  ;;  %v2037_v60 = vadd.f32 %v1837_v40, %v613_v42 }
 0x13b   :  { %v1567_v27 = vpop.eup %1566  ;;  %1592 = vrcp.f32 %v898_v14  ;;  %v896_v30 = vadd.f32 1.0, %v1565_v61  ;;  %v488_v14 = vpop.f32.mrf.mxu0  ;;  %v1253_v61 = vmul.f32 -1.442695, %v2022_v58 }
 0x13c   :  { %v1569_v29 = vpop.eup %1568  ;;  %1594 = vrcp.f32 %v864_v22  ;;  %v867_v32 = vadd.f32 1.0, %v1567_v27  ;;  %v2042_v22 = vadd.f32 %v1374_v20, %v1837_v40 }
 0x13d   :  { %v1571_v34 = vpop.eup %1570  ;;  %1596 = vrcp.f32 %v896_v30  ;;  %v899_v8 = vadd.f32 1.0, %v1569_v29  ;;  %v1285_v30 = vmul.f32 -1.442695, %v2027_v0  ;;  %v2047_v29 = vadd.f32 %v1406_v62, %v1837_v40 }
 0x13e   :  { %v1573_v38 = vpop.eup %1572  ;;  %1598 = vrcp.f32 %v867_v32  ;;  %v865_v41 = vadd.f32 1.0, %v1571_v34  ;;  %v1251_v34 = vmul.f32 -1.442695, %v2032_v56 }
 0x13f   :  { %v1575_v15 = vpop.eup %1574  ;;  %1600 = vrcp.f32 %v899_v8  ;;  %v897_v37 = vadd.f32 1.0, %v1573_v38  ;;  %v2052_v8 = vadd.f32 %v1837_v40, %v488_v14  ;;  %v1283_v38 = vmul.f32 -1.442695, %v2037_v60 }
 0x140   :  { %v1577_v43 = vpop.eup %1576  ;;  %v1054_v16 = vmul.f32 %v1575_v15, %v1904_v2  ;;  %1602 = vrcp.f32 %v865_v41  ;;  %v2057_v41 = vadd.f32 %v1837_v40, %v616_v3  ;;  %v1254_v15 = vmul.f32 -1.442695, %v2042_v22 }
 0x141   :  { %v1579_v48 = vpop.eup %1578  ;;  %v1086_v49 = vmul.f32 %v1577_v43, %v1907_v10  ;;  %1604 = vrcp.f32 %v897_v37  ;;  %v2063_v37 = vpop.f32.mrf.mxu1  ;;  %v1286_v43 = vmul.f32 -1.442695, %v2047_v29 }
 0x142   :  { %v1581_v50 = vpop.eup %1580  ;;  %1118 = vst [vmem:[#allocation7 + $0x50] sm:$0xff] %v1054_v16  ;;  %v1052_v2 = vmul.f32 %v1579_v48, %v1910_v13  ;;  %1606 = vpow2.f32 %v1249_v9  ;;  %v2059_v9 = vpop.f32.mrf.mxu0  ;;  %v1252_v48 = vmul.f32 -1.442695, %v2052_v8 }
 0x143   :  { %v1583_v63 = vpop.eup %1582  ;;  %1150 = vst [vmem:[#allocation7 + $0x150] sm:$0xff] %v1086_v49  ;;  %v1084_v10 = vmul.f32 %v1581_v50, %v1913_v18  ;;  %1608 = vpow2.f32 %v1281_v46 }
 0x144   :  { %v1585_v5 = vpop.eup %1584  ;;  %1116 = vst [vmem:[#allocation7 + $0x40] sm:$0xff] %v1052_v2  ;;  %v1055_v13 = vmul.f32 %v1583_v63, %v1917_v24  ;;  %1610 = vpow2.f32 %v1247_v44  ;;  %v501_v20 = vpop.f32.mrf.mxu0 }
 0x145   :  { %v1587_v7 = vpop.eup %1586  ;;  %1148 = vst [vmem:[#allocation7 + $0x140] sm:$0xff] %v1084_v10  ;;  %v1087_v18 = vmul.f32 %v1585_v5, %v1921_v31  ;;  %1612 = vpow2.f32 %v1279_v53  ;;  %v1284_v53 = vmul.f32 -1.442695, %v2057_v41  ;;  %v629_v2 = vpop.f32.mrf.mxu1 }
 0x146   :  { %v1589_v19 = vpop.eup %1588  ;;  %1119 = vst [vmem:[#allocation7 + $0x58] sm:$0xff] %v1055_v13  ;;  %v1053_v24 = vmul.f32 %v1587_v7, %v1926_v35  ;;  %1614 = vpow2.f32 %v1250_v21 }
 0x147   :  { %v1591_v27 = vpop.eup %1590  ;;  %1151 = vst [vmem:[#allocation7 + $0x158] sm:$0xff] %v1087_v18  ;;  %v1085_v31 = vmul.f32 %v1589_v19, %v1931_v39  ;;  %1616 = vpow2.f32 %v1282_v55  ;;  %v1378_v55 = vpop.f32.mrf.mxu0 }
 0x148   :  { %v1593_v32 = vpop.eup %1592  ;;  %1117 = vst [vmem:[#allocation7 + $0x48] sm:$0xff] %v1053_v24  ;;  %v1058_v35 = vmul.f32 %v1591_v27, %v1936_v45  ;;  %1618 = vpow2.f32 %v1248_v6 }
 0x149   :  { %v1595_v36 = vpop.eup %1594  ;;  %1149 = vst [vmem:[#allocation7 + $0x148] sm:$0xff] %v1085_v31  ;;  %v1090_v39 = vmul.f32 %v1593_v32, %v1941_v51  ;;  %1620 = vpow2.f32 %v1280_v12  ;;  %v504_v19 = vpop.f32.mrf.mxu0 }
 0x14a   :  { %v1597_v42 = vpop.eup %1596  ;;  %1122 = vst [vmem:[#allocation7 + $0x70] sm:$0xff] %v1058_v35  ;;  %v1056_v45 = vmul.f32 %v1595_v36, %v1946_v54  ;;  %1622 = vpow2.f32 %v1253_v61 }
 0x14b   :  { %v1599_v46 = vpop.eup %1598  ;;  %1154 = vst [vmem:[#allocation7 + $0x170] sm:$0xff] %v1090_v39  ;;  %v1088_v51 = vmul.f32 %v1597_v42, %v1951_v59  ;;  %1624 = vpow2.f32 %v1285_v30  ;;  %v1381_v36 = vpop.f32.mrf.mxu0  ;;  %v2075_v42 = vadd.f32 %v2059_v9, %v1837_v40  ;;  %v2085_v9 = vadd.f32 %v1837_v40, %v629_v2 }
 0x14c   :  { %v1601_v16 = vpop.eup %1600  ;;  %1120 = vst [vmem:[#allocation7 + $0x60] sm:$0xff] %v1056_v45  ;;  %v1059_v44 = vmul.f32 %v1599_v46, %v1956_v1  ;;  %1626 = vpow2.f32 %v1251_v34 }
 0x14d   :  { %v1603_v54 = vpop.eup %1602  ;;  %1152 = vst [vmem:[#allocation7 + $0x160] sm:$0xff] %v1088_v51  ;;  %v1091_v49 = vmul.f32 %v1601_v16, %v1961_v11  ;;  %1628 = vpow2.f32 %v1283_v38  ;;  %v2079_v51 = vadd.f32 %v2063_v37, %v1837_v40  ;;  %v2089_v37 = vadd.f32 %v1378_v55, %v1837_v40 }
 0x14e   :  { %v1605_v50 = vpop.eup %1604  ;;  %1123 = vst [vmem:[#allocation7 + $0x78] sm:$0xff] %v1059_v44  ;;  %v1057_v59 = vmul.f32 %v1603_v54, %v1966_v17  ;;  %1630 = vpow2.f32 %v1254_v15  ;;  %v1410_v17 = vpop.f32.mrf.mxu1  ;;  %v2082_v44 = vadd.f32 %v1837_v40, %v501_v20 }
 0x14f   :  { %v1607_v21 = vpop.eup %1606  ;;  %1155 = vst [vmem:[#allocation7 + $0x178] sm:$0xff] %v1091_v49  ;;  %v1089_v1 = vmul.f32 %v1605_v50, %v1971_v23  ;;  %1632 = vpow2.f32 %v1286_v43  ;;  %v517_v49 = vpop.f32.mrf.mxu0 }
 0x150   :  { %v1609_v62 = vpop.eup %1608  ;;  %1121 = vst [vmem:[#allocation7 + $0x68] sm:$0xff] %v1057_v59  ;;  %v870_v63 = vadd.f32 1.0, %v1607_v21  ;;  %1634 = vpow2.f32 %v1252_v48  ;;  %v632_v3 = vpop.f32.mrf.mxu1  ;;  %v1257_v59 = vmul.f32 -1.442695, %v2075_v42 }
 0x151   :  { %v1611_v11 = vpop.eup %1610  ;;  %1153 = vst [vmem:[#allocation7 + $0x168] sm:$0xff] %v1089_v1  ;;  %v902_v10 = vadd.f32 1.0, %v1609_v62  ;;  %1636 = vpow2.f32 %v1284_v53  ;;  %v1289_v62 = vmul.f32 -1.442695, %v2079_v51 }
 0x152   :  { %v1613_v5 = vpop.eup %1612  ;;  %1638 = vrcp.f32 %v870_v63  ;;  %v868_v13 = vadd.f32 1.0, %v1611_v11  ;;  %v1413_v45 = vpop.f32.mrf.mxu1  ;;  %v2093_v63 = vadd.f32 %v1410_v17, %v1837_v40 }
 0x153   :  { %v1615_v6 = vpop.eup %1614  ;;  %1640 = vrcp.f32 %v902_v10  ;;  %v900_v7 = vadd.f32 1.0, %v1613_v5  ;;  %v1255_v10 = vmul.f32 -1.442695, %v2082_v44  ;;  %v2098_v5 = vadd.f32 %v1837_v40, %v504_v19  ;;  %v1382_v17 = vpop.f32.mrf.mxu0 }
 0x154   :  { %v1617_v18 = vpop.eup %1616  ;;  %1642 = vrcp.f32 %v868_v13  ;;  %v871_v23 = vadd.f32 1.0, %v1615_v6  ;;  %v645_v21 = vpop.f32.mrf.mxu1  ;;  %v1287_v6 = vmul.f32 -1.442695, %v2085_v9 }
 0x155   :  { %v1619_v12 = vpop.eup %1618  ;;  %1644 = vrcp.f32 %v900_v7  ;;  %v903_v14 = vadd.f32 1.0, %v1617_v18  ;;  %v2103_v7 = vadd.f32 %v1837_v40, %v632_v3 }
 0x156   :  { %v1621_v24 = vpop.eup %1620  ;;  %1646 = vrcp.f32 %v871_v23  ;;  %v869_v61 = vadd.f32 1.0, %v1619_v12  ;;  %v1258_v23 = vmul.f32 -1.442695, %v2089_v37  ;;  %v2108_v12 = vadd.f32 %v1381_v36, %v1837_v40 }
 0x157   :  { %v1623_v27 = vpop.eup %1622  ;;  %1648 = vrcp.f32 %v903_v14  ;;  %v901_v31 = vadd.f32 1.0, %v1621_v24  ;;  %v1414_v14 = vpop.f32.mrf.mxu1  ;;  %v1290_v24 = vmul.f32 -1.442695, %v2093_v63 }
 0x158   :  { %v1625_v30 = vpop.eup %1624  ;;  %1650 = vrcp.f32 %v869_v61  ;;  %v874_v32 = vadd.f32 1.0, %v1623_v27  ;;  %v2113_v61 = vadd.f32 %v1413_v45, %v1837_v40  ;;  %v1256_v27 = vmul.f32 -1.442695, %v2098_v5 }
 0x159   :  { %v1627_v35 = vpop.eup %1626  ;;  %1652 = vrcp.f32 %v901_v31  ;;  %v906_v34 = vadd.f32 1.0, %v1625_v30  ;;  %v2118_v31 = vadd.f32 %v1837_v40, %v517_v49  ;;  %v648_v45 = vpop.f32.mrf.mxu1 }
 0x15a   :  { %v1629_v39 = vpop.eup %1628  ;;  %1654 = vrcp.f32 %v874_v32  ;;  %v872_v38 = vadd.f32 1.0, %v1627_v35  ;;  %v1288_v32 = vmul.f32 -1.442695, %v2103_v7  ;;  %v2123_v35 = vadd.f32 %v1837_v40, %v645_v21 }
 0x15b   :  { %v1631_v15 = vpop.eup %1630  ;;  %1656 = vrcp.f32 %v906_v34  ;;  %v904_v46 = vadd.f32 1.0, %v1629_v39  ;;  %v520_v34 = vpop.f32.mrf.mxu0  ;;  %v1261_v39 = vmul.f32 -1.442695, %v2108_v12 }
 0x15c   :  { %v1633_v43 = vpop.eup %1632  ;;  %1658 = vrcp.f32 %v872_v38  ;;  %v875_v16 = vadd.f32 1.0, %v1631_v15  ;;  %v2128_v38 = vadd.f32 %v1382_v17, %v1837_v40 }
 0x15d   :  { %v1635_v48 = vpop.eup %1634  ;;  %1660 = vrcp.f32 %v904_v46  ;;  %v907_v54 = vadd.f32 1.0, %v1633_v43  ;;  %v1293_v46 = vmul.f32 -1.442695, %v2113_v61  ;;  %v2133_v43 = vadd.f32 %v1414_v14, %v1837_v40 }
 0x15e   :  { %v1637_v53 = vpop.eup %1636  ;;  %1662 = vrcp.f32 %v875_v16  ;;  %v873_v50 = vadd.f32 1.0, %v1635_v48  ;;  %v1259_v48 = vmul.f32 -1.442695, %v2118_v31 }
 0x15f   :  { %v1639_v1 = vpop.eup %1638  ;;  %1664 = vrcp.f32 %v907_v54  ;;  %v905_v20 = vadd.f32 1.0, %v1637_v53  ;;  %v2138_v54 = vadd.f32 %v1837_v40, %v520_v34  ;;  %v1291_v53 = vmul.f32 -1.442695, %v2123_v35 }
 0x160   :  { %v1641_v2 = vpop.eup %1640  ;;  %v1062_v11 = vmul.f32 %v1639_v1, %v1989_v26  ;;  %1666 = vrcp.f32 %v873_v50  ;;  %v1734_v50 = vld [vmem:[%s2178_s2] ss:$0 sm:$0xff]  ;;  %v1262_v40 = vmul.f32 -1.442695, %v2128_v38  ;;  %s1805_s2 = smov [#allocation7]  }
 0x161   :  { %v1643_v55 = vpop.eup %1642  ;;  %v1094_v13 = vmul.f32 %v1641_v2, %v1993_v4  ;;  %1668 = vrcp.f32 %v905_v20  ;;  %v1294_v20 = vmul.f32 -1.442695, %v2133_v43  ;;  %s1177_s26 = sshll.u32 %s1805_s2, 4  ;;  %s1178_s26 = int_to_ptr.vmem [resolvable:$true] %s1177_s26 }
 0x162   :  { %v1645_v18 = vpop.eup %1644  ;;  %1126 = vst [vmem:[#allocation7 + $0x90] sm:$0xff] %v1062_v11  ;;  %v1060_v26 = vmul.f32 %v1643_v55, %v1996_v33  ;;  %1670 = vpow2.f32 %v1257_v59  ;;  %v2145_v59 = vadd.f32 %v1734_v50, %v648_v45  ;;  %v1260_v11 = vmul.f32 -1.442695, %v2138_v54  ;;  %s1775_s27 = scalar_lea.vmem %s1178_s26, 8192  ;;  %p1780_p11 = scmp.lt.s32.totalorder %s1178_s26, %s1178_s26 }
 0x163   :  { %v1647_v19 = vpop.eup %1646  ;;  %1158 = vst [vmem:[#allocation7 + $0x190] sm:$0xff] %v1094_v13  ;;  %v1092_v4 = vmul.f32 %v1645_v18, %v1999_v25  ;;  %1672 = vpow2.f32 %v1289_v62  ;;  %p1776_p10 = scmp.ne.s32.totalorder %s1178_s26, %s1775_s27  ;;  %p1781_p12 = scmp.lt.s32.totalorder %s1775_s27, %s1775_s27 }
 0x164   :  { %v1649_v3 = vpop.eup %1648  ;;  %1124 = vst [vmem:[#allocation7 + $0x80] sm:$0xff] %v1060_v26  ;;  %v1063_v33 = vmul.f32 %v1647_v19, %v2003_v28  ;;  %1674 = vpow2.f32 %v1255_v10  ;;  %v1292_v55 = vmul.f32 -1.442695, %v2145_v59 }
 0x165   :  { %v1651_v30 = vpop.eup %1650  ;;  %1156 = vst [vmem:[#allocation7 + $0x180] sm:$0xff] %v1092_v4  ;;  %v1095_v25 = vmul.f32 %v1649_v3, %v2007_v47  ;;  %1676 = vpow2.f32 %v1287_v6  ;;  %p1782_p13 = por %p1781_p12, %p1780_p11 }
 0x166   :  { %v1653_v36 = vpop.eup %1652  ;;  %1127 = vst [vmem:[#allocation7 + $0x98] sm:$0xff] %v1063_v33  ;;  %v1061_v28 = vmul.f32 %v1651_v30, %v2012_v52  ;;  %1678 = vpow2.f32 %v1258_v23 }
 0x167   :  { %v1655_v15 = vpop.eup %1654  ;;  %1159 = vst [vmem:[#allocation7 + $0x198] sm:$0xff] %v1095_v25  ;;  %v1093_v47 = vmul.f32 %v1653_v36, %v2017_v57  ;;  %1680 = vpow2.f32 %v1290_v24  ;;  %p1783_p0 = pnand %p1782_p13, %p1776_p10 }
 0x168   :  { %v1657_v16 = vpop.eup %1656  ;;  %1125 = vst [vmem:[#allocation7 + $0x88] sm:$0xff] %v1061_v28  ;;  %v1066_v52 = vmul.f32 %v1655_v15, %v2022_v58  ;;  %1682 = vpow2.f32 %v1256_v27 }
 0x169   :  { %v1659_v49 = vpop.eup %1658  ;;  %1157 = vst [vmem:[#allocation7 + $0x188] sm:$0xff] %v1093_v47  ;;  %v1098_v57 = vmul.f32 %v1657_v16, %v2027_v0  ;;  %1684 = vpow2.f32 %v1288_v32 }
 0x16a   :  { %v1661_v58 = vpop.eup %1660  ;;  %1130 = vst [vmem:[#allocation7 + $0xb0] sm:$0xff] %v1066_v52  ;;  %v1064_v21 = vmul.f32 %v1659_v49, %v2032_v56  ;;  %1686 = vpow2.f32 %v1261_v39 }
 0x16b   :  { %v1663_v1 = vpop.eup %1662  ;;  %1162 = vst [vmem:[#allocation7 + $0x1b0] sm:$0xff] %v1098_v57  ;;  %v1096_v0 = vmul.f32 %v1661_v58, %v2037_v60  ;;  %1688 = vpow2.f32 %v1293_v46 }
 0x16c   :  { %v1665_v62 = vpop.eup %1664  ;;  %1128 = vst [vmem:[#allocation7 + $0xa0] sm:$0xff] %v1064_v21  ;;  %v1067_v2 = vmul.f32 %v1663_v1, %v2042_v22  ;;  %1690 = vpow2.f32 %v1259_v48 }
 0x16d   :  { %v1667_v10 = vpop.eup %1666  ;;  %1160 = vst [vmem:[#allocation7 + $0x1a0] sm:$0xff] %v1096_v0  ;;  %v1099_v56 = vmul.f32 %v1665_v62, %v2047_v29  ;;  %1692 = vpow2.f32 %v1291_v53 }
 0x16e   :  { %v1669_v13 = vpop.eup %1668  ;;  %1131 = vst [vmem:[#allocation7 + $0xb8] sm:$0xff] %v1067_v2  ;;  %v1065_v60 = vmul.f32 %v1667_v10, %v2052_v8  ;;  %1694 = vpow2.f32 %v1262_v40 }
 0x16f   :  { %v1671_v6 = vpop.eup %1670  ;;  %1163 = vst [vmem:[#allocation7 + $0x1b8] sm:$0xff] %v1099_v56  ;;  %v1097_v17 = vmul.f32 %v1669_v13, %v2057_v41  ;;  %1696 = vpow2.f32 %v1294_v20 }
 0x170   :  { %v1673_v22 = vpop.eup %1672  ;;  %1129 = vst [vmem:[#allocation7 + $0xa8] sm:$0xff] %v1065_v60  ;;  %v878_v18 = vadd.f32 1.0, %v1671_v6  ;;  %1698 = vpow2.f32 %v1260_v11 }
 0x171   :  { %v1675_v26 = vpop.eup %1674  ;;  %1161 = vst [vmem:[#allocation7 + $0x1a8] sm:$0xff] %v1097_v17  ;;  %v910_v29 = vadd.f32 1.0, %v1673_v22  ;;  %1700 = vpow2.f32 %v1292_v55 }
 0x172   :  { %v1677_v23 = vpop.eup %1676  ;;  %1702 = vrcp.f32 %v878_v18  ;;  %v876_v14 = vadd.f32 1.0, %v1675_v26 }
 0x173   :  { %v1679_v19 = vpop.eup %1678  ;;  %1704 = vrcp.f32 %v910_v29  ;;  %v908_v8 = vadd.f32 1.0, %v1677_v23 }
 0x174   :  { %v1681_v4 = vpop.eup %1680  ;;  %1706 = vrcp.f32 %v876_v14  ;;  %v879_v24 = vadd.f32 1.0, %v1679_v19 }
 0x175   :  { %v1683_v3 = vpop.eup %1682  ;;  %1708 = vrcp.f32 %v908_v8  ;;  %v911_v41 = vadd.f32 1.0, %v1681_v4 }
 0x176   :  { %v1685_v33 = vpop.eup %1684  ;;  %1710 = vrcp.f32 %v879_v24  ;;  %v877_v27 = vadd.f32 1.0, %v1683_v3 }
 0x177   :  { %v1687_v30 = vpop.eup %1686  ;;  %1712 = vrcp.f32 %v911_v41  ;;  %v909_v25 = vadd.f32 1.0, %v1685_v33 }
 0x178   :  { %v1689_v32 = vpop.eup %1688  ;;  %1714 = vrcp.f32 %v877_v27  ;;  %v882_v34 = vadd.f32 1.0, %v1687_v30 }
 0x179   :  { %v1691_v36 = vpop.eup %1690  ;;  %1716 = vrcp.f32 %v909_v25  ;;  %v914_v28 = vadd.f32 1.0, %v1689_v32 }
 0x17a   :  { %v1693_v39 = vpop.eup %1692  ;;  %1718 = vrcp.f32 %v882_v34  ;;  %v880_v45 = vadd.f32 1.0, %v1691_v36 }
 0x17b   :  { %v1695_v15 = vpop.eup %1694  ;;  %1720 = vrcp.f32 %v914_v28  ;;  %v912_v47 = vadd.f32 1.0, %v1693_v39 }
 0x17c   :  { %v1697_v46 = vpop.eup %1696  ;;  %1722 = vrcp.f32 %v880_v45  ;;  %v883_v16 = vadd.f32 1.0, %v1695_v15 }
 0x17d   :  { %v1699_v52 = vpop.eup %1698  ;;  %1724 = vrcp.f32 %v912_v47  ;;  %v915_v48 = vadd.f32 1.0, %v1697_v46 }
 0x17e   :  { %v1701_v49 = vpop.eup %1700  ;;  %1726 = vrcp.f32 %v883_v16  ;;  %v881_v57 = vadd.f32 1.0, %v1699_v52 }
 0x17f   :  { %v1703_v53 = vpop.eup %1702  ;;  %1728 = vrcp.f32 %v915_v48  ;;  %v913_v50 = vadd.f32 1.0, %v1701_v49 }
 0x180   :  { %v1705_v58 = vpop.eup %1704  ;;  %v1070_v21 = vmul.f32 %v1703_v53, %v2075_v42  ;;  %1730 = vrcp.f32 %v881_v57 }
 0x181   :  { %v1707_v40 = vpop.eup %1706  ;;  %v1102_v1 = vmul.f32 %v1705_v58, %v2079_v51  ;;  %1732 = vrcp.f32 %v913_v50 }
 0x182   :  { %v1709_v0 = vpop.eup %1708  ;;  %1134 = vst [vmem:[#allocation7 + $0xd0] sm:$0xff] %v1070_v21  ;;  %v1068_v20 = vmul.f32 %v1707_v40, %v2082_v44 }
 0x183   :  { %v1711_v62 = vpop.eup %1710  ;;  %1166 = vst [vmem:[#allocation7 + $0x1d0] sm:$0xff] %v1102_v1  ;;  %v1100_v2 = vmul.f32 %v1709_v0, %v2085_v9 }
 0x184   :  { %v1713_v11 = vpop.eup %1712  ;;  %1132 = vst [vmem:[#allocation7 + $0xc0] sm:$0xff] %v1068_v20  ;;  %v1071_v10 = vmul.f32 %v1711_v62, %v2089_v37 }
 0x185   :  { %v1715_v56 = vpop.eup %1714  ;;  %1164 = vst [vmem:[#allocation7 + $0x1c0] sm:$0xff] %v1100_v2  ;;  %v1103_v42 = vmul.f32 %v1713_v11, %v2093_v63 }
 0x186   :  { %v1717_v55 = vpop.eup %1716  ;;  %1135 = vst [vmem:[#allocation7 + $0xd8] sm:$0xff] %v1071_v10  ;;  %v1069_v51 = vmul.f32 %v1715_v56, %v2098_v5 }
 0x187   :  { %v1719_v13 = vpop.eup %1718  ;;  %1167 = vst [vmem:[#allocation7 + $0x1d8] sm:$0xff] %v1103_v42  ;;  %v1101_v44 = vmul.f32 %v1717_v55, %v2103_v7 }
 0x188   :  { %v1721_v60 = vpop.eup %1720  ;;  %1133 = vst [vmem:[#allocation7 + $0xc8] sm:$0xff] %v1069_v51  ;;  %v1074_v9 = vmul.f32 %v1719_v13, %v2108_v12 }
 0x189   :  { %v1723_v6 = vpop.eup %1722  ;;  %1165 = vst [vmem:[#allocation7 + $0x1c8] sm:$0xff] %v1101_v44  ;;  %v1106_v37 = vmul.f32 %v1721_v60, %v2113_v61 }
 0x18a   :  { %v1725_v17 = vpop.eup %1724  ;;  %1138 = vst [vmem:[#allocation7 + $0xf0] sm:$0xff] %v1074_v9  ;;  %v1072_v63 = vmul.f32 %v1723_v6, %v2118_v31 }
 0x18b   :  { %v1727_v22 = vpop.eup %1726  ;;  %1170 = vst [vmem:[#allocation7 + $0x1f0] sm:$0xff] %v1106_v37  ;;  %v1104_v5 = vmul.f32 %v1725_v17, %v2123_v35 }
 0x18c   :  { %v1729_v18 = vpop.eup %1728  ;;  %1136 = vst [vmem:[#allocation7 + $0xe0] sm:$0xff] %v1072_v63  ;;  %v1075_v7 = vmul.f32 %v1727_v22, %v2128_v38 }
 0x18d   :  { %v1731_v26 = vpop.eup %1730  ;;  %1168 = vst [vmem:[#allocation7 + $0x1e0] sm:$0xff] %v1104_v5  ;;  %v1107_v12 = vmul.f32 %v1729_v18, %v2133_v43 }
 0x18e   :  { %v1733_v29 = vpop.eup %1732  ;;  %1139 = vst [vmem:[#allocation7 + $0xf8] sm:$0xff] %v1075_v7  ;;  %v1073_v61 = vmul.f32 %v1731_v26, %v2138_v54 }
 0x18f   :  { %1171 = vst [vmem:[#allocation7 + $0x1f8] sm:$0xff] %v1107_v12  ;;  %v1105_v31 = vmul.f32 %v1733_v29, %v2145_v59 }
 0x190   :  { %1137 = vst [vmem:[#allocation7 + $0xe8] sm:$0xff] %v1073_v61 }
 0x191   :  { %1169 = vst [vmem:[#allocation7 + $0x1e8] sm:$0xff] %v1105_v31 }
 0x192   :  { %1786 = shalt.err (!%p1783_p0)
}
 0x193   :  { %s1806_s28 = smov 128   ;;  %s1807_s29 = smov 8  }
 0x194   :  { %1183 = dma.vmem_to_hbm [thread:$0]  %s1178_s26, 8192, %s2179_s3, [#allocation4], %s1806_s28, %s1806_s28, %s1807_s29  }
 0x195   :  { %1799 = dma.done.wait [#allocation4], 8192  }
 0x196   :  { %1800 = vsyncadd [#allocation4], 4294959104 }
 0x197   :  { %1187 = vsyncpa [#allocation3], 1 }
 0x198   :  { %1188 = vsyncpa [#allocation6], 1 }
 0x199   :  { %1189 = vsyncpa [#allocation4], 1 }

</bundles_post_ra>
